<compile_context>
chip_gen: v5e
topology: v5e:2x2
jax: 0.10.0
libtpu: 0.0.40
codegen_flags: <defaults>
</compile_context>

<pallas_src>
import functools

import jax
import jax.numpy as jnp
from jax.experimental import pallas as pl
from jax.experimental.pallas import tpu as pltpu

_LANES = 128
_TARGET_TILE_BYTES = 2 * 1024 * 1024   # ~2 MiB of input per grid step per input
_SINGLE_STEP_BYTES = 256 * 1024        # below this, one grid step is fine


def _sublane_multiple(dtype):
    # vreg sublane packing: 8 rows for 4-byte, 16 for 2-byte, 32 for 1-byte dtypes.
    return 8 * (4 // jnp.dtype(dtype).itemsize)


def _round_up(x, m):
    return ((x + m - 1) // m) * m


def _huber_terms(x, y, inv_delta):
    # SmoothL1 on scaled diff d = (x - y) / delta, computed in f32 on the VPU.
    d = (x.astype(jnp.float32) - y.astype(jnp.float32)) * jnp.float32(inv_delta)
    ad = jnp.abs(d)
    return jnp.where(ad < 1.0, 0.5 * d * d, ad - 0.5)


def _huber_kernel(x_ref, y_ref, out_ref, *, inv_delta, rows, tile_rows, need_mask):
    per = _huber_terms(x_ref[...], y_ref[...], inv_delta)

    def _partial(p):
        # Per-tile partial sum kept as an (8, 128) f32 vreg: pure elementwise
        # adds, no cross-lane/XLU work on the per-step path.
        return jnp.sum(p.reshape(tile_rows // 8, 8, _LANES), axis=0)

    if not need_mask:
        out_ref[0] = _partial(per)
    else:
        # Only the last grid step can read past `rows` (ragged boundary block);
        # gate the mask there so all other steps stay mask-free on the VPU.
        i = pl.program_id(0)
        last = pl.num_programs(0) - 1

        @pl.when(i != last)
        def _():
            out_ref[0] = _partial(per)

        @pl.when(i == last)
        def _():
            row_ids = (i * tile_rows
                       + jax.lax.broadcasted_iota(jnp.int32, per.shape, 0))
            out_ref[0] = _partial(jnp.where(row_ids < rows, per, 0.0))


@functools.partial(jax.jit, static_argnames=("delta",))
def huber_loss(x, x_hat, delta=1.0):
    """Equivalent of HuberLoss(delta).forward(x, x_hat) -> scalar f32."""
    assert x.shape == x_hat.shape
    if float(delta) <= 0.0:
        raise ValueError("delta must be > 0")
    n_elem = x.size
    inv_delta = 1.0 / float(delta)

    # Keep the native dtype in HBM (halves bandwidth for bf16/f16); fall back to
    # f32 for anything the kernel does not handle natively.
    # TODO(synk): float64 inputs are computed in f32 (no native f64 on TPU).
    if (x.dtype != x_hat.dtype
            or not jnp.issubdtype(x.dtype, jnp.floating)
            or jnp.dtype(x.dtype).itemsize > 4):
        x = x.astype(jnp.float32)
        x_hat = x_hat.astype(jnp.float32)

    sub = _sublane_multiple(x.dtype)   # 8 (f32) / 16 (bf16, f16) / 32 (8-bit)
    chunk = sub * _LANES
    itemsize = jnp.dtype(x.dtype).itemsize

    xf = jnp.ravel(x)                  # free reshape for contiguous arrays
    yf = jnp.ravel(x_hat)

    # Bulk (chunk-aligned prefix) goes through the kernel; the < chunk-sized
    # tail is a tiny XLA expression. No full-array padding copies.
    bulk = n_elem - (n_elem % chunk)
    total = jnp.float32(0.0)

    if bulk:
        if bulk == n_elem:             # aligned: zero-copy path
            xb, yb = xf, yf
        else:
            xb = jax.lax.slice(xf, (0,), (bulk,))
            yb = jax.lax.slice(yf, (0,), (bulk,))
        rows = bulk // _LANES          # always a multiple of `sub`
        x2d = xb.reshape(rows, _LANES)
        y2d = yb.reshape(rows, _LANES)

        # Dtype-aware tile: ~2 MiB of input per step per input.
        max_tile_rows = max(sub,
                            (_TARGET_TILE_BYTES // (_LANES * itemsize)) // sub * sub)

        if rows * _LANES * itemsize <= _SINGLE_STEP_BYTES:
            # Tiny input: one full-extent block (per-step overhead would dominate).
            tile_rows = rows
            grid_rows = 1
        else:
            # At least 2 grid steps so DMA pipelines and v7x's 2 TCs both work;
            # prefer an even grid for balanced megacore sharding.
            tile_rows = min(max_tile_rows, _round_up(pl.cdiv(rows, 2), sub))
            grid_rows = pl.cdiv(rows, tile_rows)
            if grid_rows > 1 and grid_rows % 2 == 1:
                t2 = _round_up(pl.cdiv(rows, grid_rows + 1), sub)
                tile_rows = min(tile_rows, t2)
                grid_rows = pl.cdiv(rows, tile_rows)
        need_mask = (rows % tile_rows) != 0

        kernel = functools.partial(
            _huber_kernel,
            inv_delta=inv_delta,
            rows=rows,
            tile_rows=tile_rows,
            need_mask=need_mask,
        )

        partials = pl.pallas_call(
            kernel,
            out_shape=jax.ShapeDtypeStruct((grid_rows, 8, _LANES), jnp.float32),
            grid=(grid_rows,),
            in_specs=[
                pl.BlockSpec((tile_rows, _LANES), lambda i: (i, 0)),
                pl.BlockSpec((tile_rows, _LANES), lambda i: (i, 0)),
            ],
            out_specs=pl.BlockSpec((1, 8, _LANES), lambda i: (i, 0, 0)),
            compiler_params=pltpu.CompilerParams(
                # Independent output blocks per step -> megacore-shards on v7x,
                # harmless on single-core v5e/v6e.
                dimension_semantics=("parallel",),
            ),
        )(x2d, y2d)
        total = total + jnp.sum(partials)

    tail = n_elem - bulk
    if tail:
        xt = jax.lax.slice(xf, (bulk,), (n_elem,))
        yt = jax.lax.slice(yf, (bulk,), (n_elem,))
        total = total + jnp.sum(_huber_terms(xt, yt, inv_delta))

    mean = total / jnp.float32(n_elem)
    return mean * jnp.float32(delta) * jnp.float32(delta)


def _reference(x, x_hat, delta=1.0):
    d = (x.astype(jnp.float32) - x_hat.astype(jnp.float32)) / delta
    ad = jnp.abs(d)
    per = jnp.where(ad < 1.0, 0.5 * d * d, ad - 0.5)
    return jnp.mean(per) * delta * delta


if __name__ == "__main__":
    key = jax.random.PRNGKey(0)
    k1, k2, k3, k4, k5, k6 = jax.random.split(key, 6)

    # Small NCHW-like inputs (loss is shape-agnostic / elementwise): aligned,
    # single-step path.
    x = jax.random.normal(k1, (2, 4, 16, 16), dtype=jnp.float32)
    x_hat = jax.random.normal(k2, (2, 4, 16, 16), dtype=jnp.float32)
    out = huber_loss(x, x_hat, delta=1.0)
    jax.block_until_ready(out)
    ref = _reference(x, x_hat, delta=1.0)
    assert jnp.allclose(out, ref, atol=1e-5, rtol=1e-5), (out, ref)

    # Ragged size (exercises bulk kernel + XLA tail, >=2 even grid steps) and
    # delta != 1.
    xb = jax.random.normal(k3, (3, 500, 201), dtype=jnp.float32)
    yb = jax.random.normal(k4, (3, 500, 201), dtype=jnp.float32)
    out2 = huber_loss(xb, yb, delta=1.5)
    jax.block_until_ready(out2)
    ref2 = _reference(xb, yb, delta=1.5)
    assert jnp.allclose(out2, ref2, atol=1e-5, rtol=1e-4), (out2, ref2)

    # bf16 path (native-dtype streaming, 16-row sublane multiple, 2-step grid).
    xc = jax.random.normal(k5, (4, 256, 256), dtype=jnp.bfloat16)
    yc = jax.random.normal(k6, (4, 256, 256), dtype=jnp.bfloat16)
    out3 = huber_loss(xc, yc, delta=0.5)
    jax.block_until_ready(out3)
    ref3 = _reference(xc, yc, delta=0.5)
    assert jnp.allclose(out3, ref3, atol=1e-4, rtol=1e-3), (out3, ref3)

    print("KERNEL_OK")
</pallas_src>

<mosaic_0001>
module attributes {stable_mosaic.version = 11 : i64} {
  func.func @_huber_kernel(%arg0: i32, %arg1: memref<16x128xf32, #tpu.memory_space<vmem>>, %arg2: memref<16x128xf32, #tpu.memory_space<vmem>>, %arg3: memref<1x8x128xf32, #tpu.memory_space<vmem>>) attributes {dimension_semantics = [#tpu.dimension_semantics<parallel>], iteration_bounds = array<i64: 1>, scalar_prefetch = 0 : i64, scratch_operands = 0 : i64, tpu.core_type = #tpu.core_type<tc>, window_params = [{transform_indices = @transform_0, window_bounds = array<i64: 16, 128>}, {transform_indices = @transform_1, window_bounds = array<i64: 16, 128>}, {transform_indices = @transform_2, window_bounds = array<i64: 1, 8, 128>}]} {
    %c0 = arith.constant 0 : index
    %c0_0 = arith.constant 0 : index
    %0 = vector.load %arg1[%c0, %c0_0] : memref<16x128xf32, #tpu.memory_space<vmem>>, vector<16x128xf32>
    %c0_1 = arith.constant 0 : index
    %c0_2 = arith.constant 0 : index
    %1 = vector.load %arg2[%c0_1, %c0_2] : memref<16x128xf32, #tpu.memory_space<vmem>>, vector<16x128xf32>
    %2 = arith.subf %0, %1 : vector<16x128xf32>
    %cst = arith.constant 1.000000e+00 : f32
    %3 = vector.broadcast %cst : f32 to vector<16x128xf32>
    %4 = arith.mulf %2, %3 : vector<16x128xf32>
    %5 = math.absf %4 : vector<16x128xf32>
    %cst_3 = arith.constant 1.000000e+00 : f32
    %6 = vector.broadcast %cst_3 : f32 to vector<16x128xf32>
    %7 = arith.cmpf olt, %5, %6 : vector<16x128xf32>
    %cst_4 = arith.constant 5.000000e-01 : f32
    %8 = vector.broadcast %cst_4 : f32 to vector<16x128xf32>
    %9 = arith.mulf %8, %4 : vector<16x128xf32>
    %10 = arith.mulf %9, %4 : vector<16x128xf32>
    %cst_5 = arith.constant 5.000000e-01 : f32
    %11 = vector.broadcast %cst_5 : f32 to vector<16x128xf32>
    %12 = arith.subf %5, %11 : vector<16x128xf32>
    %13 = arith.select %7, %10, %12 : vector<16x128xi1>, vector<16x128xf32>
    %14 = vector.shape_cast %13 : vector<16x128xf32> to vector<2x8x128xf32>
    %cst_6 = arith.constant dense<0.000000e+00> : vector<8x128xf32>
    %15 = vector.multi_reduction <add>, %14, %cst_6 [0] : vector<2x8x128xf32> to vector<8x128xf32>
    %c0_7 = arith.constant 0 : index
    %c0_8 = arith.constant 0 : index
    %c0_9 = arith.constant 0 : index
    %16 = vector.load %arg3[%c0_7, %c0_8, %c0_9] : memref<1x8x128xf32, #tpu.memory_space<vmem>>, vector<1x8x128xf32>
    %17 = vector.shape_cast %16 : vector<1x8x128xf32> to vector<8x128xf32>
    %18 = vector.shape_cast %15 : vector<8x128xf32> to vector<1x8x128xf32>
    tpu.vector_store %arg3[%c0_7, %c0_8, %c0_9], %18 {strides = array<i32>} : memref<1x8x128xf32, #tpu.memory_space<vmem>>, vector<1x8x128xf32>,
    return
  }
  func.func @transform_0(%arg0: i32) -> (i32, i32) {
    %c0_i32 = arith.constant 0 : i32
    %c0_i32_0 = arith.constant 0 : i32
    return %arg0, %c0_i32 : i32, i32
  }
  func.func @transform_1(%arg0: i32) -> (i32, i32) {
    %c0_i32 = arith.constant 0 : i32
    %c0_i32_0 = arith.constant 0 : i32
    return %arg0, %c0_i32 : i32, i32
  }
  func.func @transform_2(%arg0: i32) -> (i32, i32, i32) {
    %c0_i32 = arith.constant 0 : i32
    %c0_i32_0 = arith.constant 0 : i32
    %c0_i32_1 = arith.constant 0 : i32
    return %arg0, %c0_i32, %c0_i32_0 : i32, i32, i32
  }
}

</mosaic_0001>

<bundles_post_ra>
// kernel: huber_loss.1
= control target key start
LH: loop header
LB: loop body
LE: loop exit
PB: predicated region body
PF: predicated region fallthrough
CT: control target
= control target key end

     0   :  { %s67_s0 = inlined_call_operand.vmem [shape: f32[16,128], index: 0, kind: input, shape index: {}]   ;;  %s68_s1 = inlined_call_operand.vmem [shape: f32[16,128], index: 1, kind: input, shape index: {}]   ;;  %s69_s2 = inlined_call_operand.vmem [shape: f32[1,8,128], index: 2, kind: output, shape index: {}]  }
   0x1   :  { %v11_v0 = vld [vmem:[%s67_s0] sm:$0xff]  ;;  %v12_v1 = vld [vmem:[%s67_s0 + $0x8] sm:$0xff] }
   0x2   :  { %v13_v2 = vld [vmem:[%s68_s1] sm:$0xff]  ;;  %v14_v3 = vld [vmem:[%s68_s1 + $0x8] sm:$0xff] }
   0x3   :  { %v15_v4 = vsub.f32 %v11_v0, %v13_v2  ;;  %v16_v5 = vsub.f32 %v12_v1, %v14_v3 }
   0x5   :  { %v17_v6 = vand.u32 2147483647, %v15_v4  ;;  %v21_v7 = vmul.f32 0.5, %v15_v4  ;;  %v18_v8 = vand.u32 2147483647, %v16_v5  ;;  %v22_v9 = vmul.f32 0.5, %v16_v5 }
   0x7   :  { %vm19_vm0 = vcmp.lt.f32.partialorder %v17_v6, 1.0  ;;  %v23_v10 = vmul.f32 %v21_v7, %v15_v4  ;;  %v35_v11 = vadd.f32 -0.5, %v17_v6  ;;  %vm20_vm1 = vcmp.lt.f32.partialorder %v18_v8, 1.0 }
   0x8   :  { %v24_v12 = vmul.f32 %v22_v9, %v16_v5  ;;  %v36_v13 = vadd.f32 -0.5, %v18_v8 }
   0x9   :  { %v27_v14 = vsel %vm19_vm0, %v23_v10, %v35_v11 }
   0xa   :  { %v28_v15 = vsel %vm20_vm1, %v24_v12, %v36_v13 }
   0xb   :  { %v29_v16 = vadd.f32 %v28_v15, %v27_v14 }
   0xd   :  { %30 = vst [vmem:[%s69_s2] sm:$0xff] %v29_v16 }

</bundles_post_ra>
